<compile_context>
chip_gen: v7x
topology: tpu7x:2x2x1
jax: 0.10.0
libtpu: 0.0.40
codegen_flags: <defaults>
</compile_context>

<pallas_src>
import re
from typing import NamedTuple

import jax
import jax.numpy as jnp
from jax.experimental import pallas as pl
from jax.experimental.pallas import tpu as pltpu
from jax.scipy.linalg import block_diag

# --- small config consistent with the module (hidden_sizes scaled down) ------
OBS_DIM = 32          # int(np.prod(observation_shape)), observation_shape=(32,)
HIDDEN = 32           # hidden_sizes = [32, 32]
ACTION_SIZE = 2       # offset = [a_long_shift, 0] implies action_size == 2
A_LONG_SHIFT = 0.0
VAR_CLIP = 1e-6
INIT_LOG_STD = 0.0

OUT_LANES = 8         # per-row packed output: [mu(2) | v | c | c_var | pad(3)]
MAX_TILE_ROWS = 2048  # max packed rows per grid step (sweepable)


class ValueInfo(NamedTuple):
    value: jnp.ndarray
    c_value: jnp.ndarray
    c_var_value: jnp.ndarray


def _softplus(x):
    # numerically stable softplus with ops that lower cleanly in Mosaic
    return jnp.maximum(x, 0.0) + jnp.log(1.0 + jnp.exp(-jnp.abs(x)))


def _round_up(x, m):
    return ((x + m - 1) // m) * m


def _default_row_pack():
    """P=2 on <=v5 (128-wide MXU tiles), P=4 on v6e/v7x (256-wide MXU)."""
    try:
        kind = jax.devices()[0].device_kind.lower()
        m = re.search(r"v(\d+)", kind)
        gen = int(m.group(1)) if m else 6
    except Exception:
        gen = 6
    return 2 if gen <= 5 else 4


# -----------------------------------------------------------------------------
# Kernel
# -----------------------------------------------------------------------------
def _dcppo_kernel(obs_ref, norm_ref, w1_ref, w2_ref, b12_ref,
                  w3_ref, b3_ref, w4_ref, b4_ref, out_ref):
    f32 = jnp.float32
    mmdt = w1_ref.dtype            # matmul operand dtype (f32 or bf16); acc is f32
    hp = w4_ref.shape[0]           # 32 * P : width of the h-lane block of layer 3

    # --- observation normalization: clip((obs - mean) * scale, -10, 10) -------
    # (rsqrt/clamp folded into `scale` at pack time; obs cast after the DMA)
    x = obs_ref[...].astype(f32)
    x = jnp.clip((x - norm_ref[0:1, :]) * norm_ref[1:2, :], -10.0, 10.0)

    # --- fused reward|constraint bodies, block-diagonal per packed row-block ---
    rc = jnp.tanh(jnp.dot(x.astype(mmdt), w1_ref[...],
                          preferred_element_type=f32) + b12_ref[0:1, :])
    rc = jnp.tanh(jnp.dot(rc.astype(mmdt), w2_ref[...],
                          preferred_element_type=f32) + b12_ref[1:2, :])
    # rc lane layout: [r_0|c_0 | r_1|c_1 | ...], 64 lanes per original row

    # --- fused mu-MLP layer-1 + value heads (one matmul) ------------------------
    # lane layout of a3: [h_0 .. h_{P-1} (32 each) | heads_0 .. heads_{P-1} (8 each)]
    a3 = jnp.dot(rc.astype(mmdt), w3_ref[...],
                 preferred_element_type=f32) + b3_ref[...]
    h = jnp.tanh(a3[:, :hp])
    heads = a3[:, hp:]             # per block: [shift, 0, v, c, cvar_raw, 0, 0, 0]

    # --- mu-MLP layer-2, pre-padded to 8 output lanes per row-block -------------
    mu = jnp.tanh(jnp.dot(h.astype(mmdt), w4_ref[...],
                          preferred_element_type=f32) + b4_ref[...])

    # apply 0.1*softplus only on the c_var lane; everything else passes raw
    lane = jax.lax.broadcasted_iota(jnp.int32, heads.shape, 1)
    heads = jnp.where((lane % 8) == 4, 0.1 * _softplus(heads), heads)

    out_ref[...] = mu + heads      # single straight lane-dense store


# -----------------------------------------------------------------------------
# Parameter construction & packing
# -----------------------------------------------------------------------------
def init_params(key):
    """Deterministic synthetic parameters (PyTorch Linear-style uniform init)."""
    def linear(k, n_in, n_out):
        k1, k2 = jax.random.split(k)
        bound = 1.0 / float(n_in) ** 0.5
        W = jax.random.uniform(k1, (n_in, n_out), jnp.float32, -bound, bound)
        b = jax.random.uniform(k2, (1, n_out), jnp.float32, -bound, bound)
        return W, b

    keys = jax.random.split(key, 9)
    p = {}
    p["rW1"], p["rb1"] = linear(keys[0], OBS_DIM, HIDDEN)
    p["rW2"], p["rb2"] = linear(keys[1], HIDDEN, HIDDEN)
    p["cW1"], p["cb1"] = linear(keys[2], OBS_DIM, HIDDEN)
    p["cW2"], p["cb2"] = linear(keys[3], HIDDEN, HIDDEN)
    p["vW"], p["vb"] = linear(keys[4], HIDDEN, 1)
    p["cvW"], p["cvb"] = linear(keys[5], HIDDEN, 1)
    p["cvarW"], p["cvarb"] = linear(keys[6], HIDDEN, 1)
    p["mW1"], p["mb1"] = linear(keys[7], 2 * HIDDEN, HIDDEN)
    p["mW2"], p["mb2"] = linear(keys[8], HIDDEN, ACTION_SIZE)
    p["log_std"] = jnp.full((1, ACTION_SIZE), INIT_LOG_STD, jnp.float32)
    # RunningMeanStdModel fresh state: mean=0, var=1
    p["obs_mean"] = jnp.zeros((1, OBS_DIM), jnp.float32)
    p["obs_var"] = jnp.ones((1, OBS_DIM), jnp.float32)
    return p


def pack_params(p, *, row_pack=None, matmul_dtype=jnp.float32):
    """Fuse per-branch weights and replicate them block-diagonally for the
    row-packed lane layout (done once, outside the kernel)."""
    P = int(row_pack) if row_pack is not None else _default_row_pack()
    H = HIDDEN
    f32 = jnp.float32

    # --- per-row fused blocks ----------------------------------------------------
    bW1 = jnp.concatenate([p["rW1"], p["cW1"]], axis=1)               # (32, 64)
    bB1 = jnp.concatenate([p["rb1"], p["cb1"]], axis=1)               # (1, 64)
    z_hh = jnp.zeros((H, H), f32)
    bW2 = jnp.block([[p["rW2"], z_hh], [z_hh, p["cW2"]]])             # (64, 64) block-diag
    bB2 = jnp.concatenate([p["rb2"], p["cb2"]], axis=1)               # (1, 64)

    # value heads, already output-aligned: cols = [0, 0, v, c, cvar_raw, 0, 0, 0]
    zc = jnp.zeros((H, 1), f32)
    hW8 = jnp.concatenate(
        [jnp.zeros((2 * H, 2), f32),
         jnp.concatenate([p["vW"], zc], axis=0),       # v_r   (from reward half)
         jnp.concatenate([zc, p["cvW"]], axis=0),      # v_c   (from constraint half)
         jnp.concatenate([zc, p["cvarW"]], axis=0),    # c_var (from constraint half)
         jnp.zeros((2 * H, 3), f32)], axis=1)                          # (64, 8)
    hB8 = jnp.concatenate(
        [jnp.array([[A_LONG_SHIFT, 0.0]], f32),        # a_long_shift folded into lane 0
         p["vb"], p["cvb"], p["cvarb"], jnp.zeros((1, 3), f32)], axis=1)   # (1, 8)

    # mu-MLP layer-2, pre-padded to 8 output lanes (mu in lanes 0-1)
    mW2_8 = jnp.concatenate([p["mW2"], jnp.zeros((H, OUT_LANES - ACTION_SIZE), f32)], axis=1)
    mB2_8 = jnp.concatenate([p["mb2"], jnp.zeros((1, OUT_LANES - ACTION_SIZE), f32)], axis=1)

    # --- replicate P row-blocks into the lane dimension ----------------------------
    bd = (lambda w: block_diag(*([w] * P))) if P > 1 else (lambda w: w)
    tr = lambda b: jnp.tile(b, (1, P))

    # rsqrt / var-clamp folded at pack time
    scale = 1.0 / jnp.sqrt(jnp.maximum(p["obs_var"], VAR_CLIP))        # (1, 32)

    packed = {
        "P": P,
        "norm": jnp.concatenate([tr(p["obs_mean"]), tr(scale)], axis=0),          # (2, 32P)
        "W1": bd(bW1).astype(matmul_dtype),                                       # (32P, 64P)
        "W2": bd(bW2).astype(matmul_dtype),                                       # (64P, 64P)
        "B12": jnp.concatenate([tr(bB1), tr(bB2)], axis=0),                       # (2, 64P)
        # layer-3 lane layout: [h_0 .. h_{P-1} | heads_0 .. heads_{P-1}]
        "W3": jnp.concatenate([bd(p["mW1"]), bd(hW8)], axis=1).astype(matmul_dtype),  # (64P, 40P)
        "B3": jnp.concatenate([tr(p["mb1"]), tr(hB8)], axis=1),                   # (1, 40P)
        "W4": bd(mW2_8).astype(matmul_dtype),                                     # (32P, 8P)
        "B4": tr(mB2_8),                                                          # (1, 8P)
        "log_std": p["log_std"],
    }
    return packed


# fixed kernel argument order (after obs)
_PARAM_ORDER = ("norm", "W1", "W2", "B12", "W3", "B3", "W4", "B4")


# -----------------------------------------------------------------------------
# Wrapper
# -----------------------------------------------------------------------------
def _restore_leading_dims(x, lead_dim, T, B):
    if lead_dim == 2:
        return x.reshape((T, B) + x.shape[1:])
    if lead_dim == 1:
        return x.reshape((B,) + x.shape[1:])
    return x.reshape(x.shape[1:])


def dcppo_forward(observation, prev_action=None, prev_reward=None, *,
                  params, tile_rows=None):
    """Mirrors DCppoModelV2.forward (prev_action / prev_reward are unused).

    `params` must be the packed parameters from `pack_params`.
    """
    P = int(params["P"])
    obs_ndim = 1  # observation_shape = (OBS_DIM,)
    lead_dim = observation.ndim - obs_ndim
    if lead_dim == 0:
        T, B = 1, 1
    elif lead_dim == 1:
        T, B = 1, observation.shape[0]
    else:
        T, B = observation.shape[0], observation.shape[1]
    TB = T * B

    # obs goes in at its native dtype (cast happens in-kernel after the DMA)
    obs2d = observation.reshape(TB, OBS_DIM)
    pad = (-TB) % P
    if pad:                         # only a <= P-1 row pad, never a full tile pad
        obs2d = jnp.pad(obs2d, ((0, pad), (0, 0)))
    rows = (TB + pad) // P
    if rows < 8:                    # tiny rollout case: round up to one sublane group
        obs2d = jnp.pad(obs2d, ((0, (8 - rows) * P), (0, 0)))
        rows = 8
    obs_packed = obs2d.reshape(rows, OBS_DIM * P)

    # --- row tiling: big tiles, capped so the grid has >= 2 steps (both v7x TCs);
    # the non-divisible last block is handled by Pallas partial-block masking. ----
    if tile_rows is None:
        tile_rows = MAX_TILE_ROWS
    tile_rows = max(8, _round_up(int(tile_rows), 8))
    if rows > 8:
        tile_rows = min(tile_rows, _round_up(pl.cdiv(rows, 2), 8))
    tile_rows = min(tile_rows, _round_up(rows, 8))
    grid = (pl.cdiv(rows, tile_rows),)

    def const_spec(name):
        # full-array block with constant index -> weights stay resident in VMEM
        return pl.BlockSpec(params[name].shape, lambda i: (0, 0))

    in_specs = [pl.BlockSpec((tile_rows, OBS_DIM * P), lambda i: (i, 0))]
    # TODO(synk): add pipeline_mode=pl.Buffered(3) on the obs spec if profiling
    # shows exposed input DMA (mostly relevant on v5e).
    in_specs += [const_spec(k) for k in _PARAM_ORDER]
    out_spec = pl.BlockSpec((tile_rows, OUT_LANES * P), lambda i: (i, 0))

    packed_out = pl.pallas_call(
        _dcppo_kernel,
        out_shape=jax.ShapeDtypeStruct((rows, OUT_LANES * P), jnp.float32),
        grid=grid,
        in_specs=in_specs,
        out_specs=out_spec,
        compiler_params=pltpu.CompilerParams(
            dimension_semantics=("parallel",),      # megacore sharding on v7x
            vmem_limit_bytes=32 * 1024 * 1024,
        ),
    )(obs_packed, *[params[k] for k in _PARAM_ORDER])

    # unpack: (rows, 8P) -> (rows*P, 8), drop padded rows, slice lanes
    out = packed_out.reshape(rows * P, OUT_LANES)[:TB]
    mu = out[:, :ACTION_SIZE]
    v_r = out[:, ACTION_SIZE]
    v_c = out[:, ACTION_SIZE + 1]
    v_c_var = out[:, ACTION_SIZE + 2]

    # log_std is a constant broadcast independent of obs -> wrapper side
    log_std = jnp.broadcast_to(params["log_std"], (TB, ACTION_SIZE))

    mu = _restore_leading_dims(mu, lead_dim, T, B)
    log_std = _restore_leading_dims(log_std, lead_dim, T, B)
    value = ValueInfo(
        value=_restore_leading_dims(v_r, lead_dim, T, B),
        c_value=_restore_leading_dims(v_c, lead_dim, T, B),
        c_var_value=_restore_leading_dims(v_c_var, lead_dim, T, B),
    )
    # TODO(synk): update_obs_rms / update_rew_rms (running-stat updates) are
    # stateful training-time ops, not part of the forward pass; not ported.
    return mu, log_std, value


# -----------------------------------------------------------------------------
# Pure-JAX reference (uses the raw, unpacked parameters)
# -----------------------------------------------------------------------------
def _reference_forward(observation, params):
    T, B = observation.shape[0], observation.shape[1]
    x = observation.reshape(T * B, -1)
    var = jnp.maximum(params["obs_var"], VAR_CLIP)
    x = jnp.clip((x - params["obs_mean"]) / jnp.sqrt(var), -10.0, 10.0)
    r = jnp.tanh(x @ params["rW1"] + params["rb1"])
    r = jnp.tanh(r @ params["rW2"] + params["rb2"])
    c = jnp.tanh(x @ params["cW1"] + params["cb1"])
    c = jnp.tanh(c @ params["cW2"] + params["cb2"])
    v_r = (r @ params["vW"] + params["vb"])[:, 0]
    v_c = (c @ params["cvW"] + params["cvb"])[:, 0]
    v_c_var = jax.nn.softplus((c @ params["cvarW"] + params["cvarb"])[:, 0]) * 0.1
    pin = jnp.concatenate([r, c], axis=1)
    h = jnp.tanh(pin @ params["mW1"] + params["mb1"])
    mu = jnp.tanh(h @ params["mW2"] + params["mb2"]) + jnp.array([[A_LONG_SHIFT, 0.0]],
                                                                 jnp.float32)
    log_std = jnp.broadcast_to(params["log_std"], mu.shape)
    rs = lambda a: a.reshape((T, B) + a.shape[1:])
    return rs(mu), rs(log_std), rs(v_r), rs(v_c), rs(v_c_var)


if __name__ == "__main__":
    key = jax.random.PRNGKey(0)
    k_params, k_obs, k_act, k_rew, k_obs2 = jax.random.split(key, 5)

    raw_params = init_params(k_params)
    packed_f32 = pack_params(raw_params, matmul_dtype=jnp.float32)  # P from device

    # --- small case (single tile, tiny-rows path) ------------------------------
    T, B = 2, 4
    observation = jax.random.normal(k_obs, (T, B, OBS_DIM), jnp.float32)
    prev_action = jax.random.normal(k_act, (T, B, ACTION_SIZE), jnp.float32)
    prev_reward = jax.random.normal(k_rew, (T, B), jnp.float32)

    mu, log_std, value = dcppo_forward(observation, prev_action, prev_reward,
                                       params=packed_f32)
    jax.block_until_ready((mu, log_std, value))

    ref_mu, ref_ls, ref_v, ref_c, ref_cv = _reference_forward(observation, raw_params)
    assert mu.shape == (T, B, ACTION_SIZE) and log_std.shape == (T, B, ACTION_SIZE)
    assert value.value.shape == (T, B)
    assert jnp.allclose(mu, ref_mu, atol=1e-5)
    assert jnp.allclose(log_std, ref_ls, atol=1e-5)
    assert jnp.allclose(value.value, ref_v, atol=1e-5)
    assert jnp.allclose(value.c_value, ref_c, atol=1e-5)
    assert jnp.allclose(value.c_var_value, ref_cv, atol=1e-5)

    # --- multi-tile case (grid > 1, partial last block masking) ----------------
    T2, B2 = 3, 40   # TB = 120
    obs2 = jax.random.normal(k_obs2, (T2, B2, OBS_DIM), jnp.float32)
    mu2, ls2, val2 = dcppo_forward(obs2, None, None, params=packed_f32,
                                   tile_rows=8)
    jax.block_until_ready((mu2, ls2, val2))
    r_mu2, r_ls2, r_v2, r_c2, r_cv2 = _reference_forward(obs2, raw_params)
    assert jnp.allclose(mu2, r_mu2, atol=1e-5)
    assert jnp.allclose(ls2, r_ls2, atol=1e-5)
    assert jnp.allclose(val2.value, r_v2, atol=1e-5)
    assert jnp.allclose(val2.c_value, r_c2, atol=1e-5)
    assert jnp.allclose(val2.c_var_value, r_cv2, atol=1e-5)

    # --- bf16-operand path (v6e/v7x recommendation), looser tolerance ----------
    packed_bf16 = pack_params(raw_params, row_pack=4, matmul_dtype=jnp.bfloat16)
    mu3, ls3, val3 = dcppo_forward(obs2, None, None, params=packed_bf16)
    jax.block_until_ready((mu3, ls3, val3))
    assert jnp.allclose(mu3, r_mu2, atol=1e-1)
    assert jnp.allclose(val3.value, r_v2, atol=1e-1)
    assert jnp.allclose(val3.c_value, r_c2, atol=1e-1)
    assert jnp.allclose(val3.c_var_value, r_cv2, atol=1e-1)

    print("KERNEL_OK")
</pallas_src>

<mosaic_0001>
module attributes {stable_mosaic.version = 11 : i64} {
  func.func @_dcppo_kernel(%arg0: i32, %arg1: memref<8x128xf32, #tpu.memory_space<vmem>>, %arg2: memref<2x128xf32, #tpu.memory_space<vmem>>, %arg3: memref<128x256xf32, #tpu.memory_space<vmem>>, %arg4: memref<256x256xf32, #tpu.memory_space<vmem>>, %arg5: memref<2x256xf32, #tpu.memory_space<vmem>>, %arg6: memref<256x160xf32, #tpu.memory_space<vmem>>, %arg7: memref<1x160xf32, #tpu.memory_space<vmem>>, %arg8: memref<128x32xf32, #tpu.memory_space<vmem>>, %arg9: memref<1x32xf32, #tpu.memory_space<vmem>>, %arg10: memref<8x32xf32, #tpu.memory_space<vmem>>) attributes {dimension_semantics = [#tpu.dimension_semantics<parallel>], iteration_bounds = array<i64: 1>, scalar_prefetch = 0 : i64, scratch_operands = 0 : i64, tpu.core_type = #tpu.core_type<tc>, window_params = [{transform_indices = @transform_0, window_bounds = array<i64: 8, 128>}, {pipeline_mode = #tpu.pipeline_mode<synchronous>, transform_indices = @transform_1, window_bounds = array<i64: 2, 128>}, {pipeline_mode = #tpu.pipeline_mode<synchronous>, transform_indices = @transform_2, window_bounds = array<i64: 128, 256>}, {pipeline_mode = #tpu.pipeline_mode<synchronous>, transform_indices = @transform_3, window_bounds = array<i64: 256, 256>}, {pipeline_mode = #tpu.pipeline_mode<synchronous>, transform_indices = @transform_4, window_bounds = array<i64: 2, 256>}, {pipeline_mode = #tpu.pipeline_mode<synchronous>, transform_indices = @transform_5, window_bounds = array<i64: 256, 160>}, {pipeline_mode = #tpu.pipeline_mode<synchronous>, transform_indices = @transform_6, window_bounds = array<i64: 1, 160>}, {pipeline_mode = #tpu.pipeline_mode<synchronous>, transform_indices = @transform_7, window_bounds = array<i64: 128, 32>}, {pipeline_mode = #tpu.pipeline_mode<synchronous>, transform_indices = @transform_8, window_bounds = array<i64: 1, 32>}, {transform_indices = @transform_9, window_bounds = array<i64: 8, 32>}]} {
    %c0 = arith.constant 0 : index
    %c0_0 = arith.constant 0 : index
    %0 = vector.load %arg1[%c0, %c0_0] : memref<8x128xf32, #tpu.memory_space<vmem>>, vector<8x128xf32>
    %c0_1 = arith.constant 0 : index
    %c0_2 = arith.constant 0 : index
    %1 = vector.load %arg2[%c0_1, %c0_2] : memref<2x128xf32, #tpu.memory_space<vmem>>, vector<1x128xf32>
    %2 = vector.broadcast %1 : vector<1x128xf32> to vector<8x128xf32>
    %3 = arith.subf %0, %2 : vector<8x128xf32>
    %c1 = arith.constant 1 : index
    %c0_3 = arith.constant 0 : index
    %4 = vector.load %arg2[%c1, %c0_3] : memref<2x128xf32, #tpu.memory_space<vmem>>, vector<1x128xf32>
    %5 = vector.broadcast %4 : vector<1x128xf32> to vector<8x128xf32>
    %6 = arith.mulf %3, %5 : vector<8x128xf32>
    %cst = arith.constant -1.000000e+01 : f32
    %cst_4 = arith.constant 1.000000e+01 : f32
    %7 = vector.broadcast %cst : f32 to vector<8x128xf32>
    %8 = arith.maximumf %7, %6 : vector<8x128xf32>
    %9 = vector.broadcast %cst_4 : f32 to vector<8x128xf32>
    %10 = arith.minimumf %9, %8 : vector<8x128xf32>
    %c0_5 = arith.constant 0 : index
    %c0_6 = arith.constant 0 : index
    %11 = vector.load %arg3[%c0_5, %c0_6] : memref<128x256xf32, #tpu.memory_space<vmem>>, vector<128x256xf32>
    %cst_7 = arith.constant dense<0.000000e+00> : vector<8x256xf32>
    %12 = tpu.matmul %10, %11, %cst_7 {dimension_numbers = #tpu.dot_dimension_numbers<[1], [0], [0], [1], [0, 0, 1, 1], [], []>} : vector<8x128xf32>, vector<128x256xf32>, vector<8x256xf32> -> vector<8x256xf32>
    %c0_8 = arith.constant 0 : index
    %c0_9 = arith.constant 0 : index
    %13 = vector.load %arg5[%c0_8, %c0_9] : memref<2x256xf32, #tpu.memory_space<vmem>>, vector<1x256xf32>
    %14 = vector.broadcast %13 : vector<1x256xf32> to vector<8x256xf32>
    %15 = arith.addf %12, %14 : vector<8x256xf32>
    %16 = math.tanh %15 : vector<8x256xf32>
    %c0_10 = arith.constant 0 : index
    %c0_11 = arith.constant 0 : index
    %17 = vector.load %arg4[%c0_10, %c0_11] : memref<256x256xf32, #tpu.memory_space<vmem>>, vector<256x256xf32>
    %cst_12 = arith.constant dense<0.000000e+00> : vector<8x256xf32>
    %18 = tpu.matmul %16, %17, %cst_12 {dimension_numbers = #tpu.dot_dimension_numbers<[1], [0], [0], [1], [0, 0, 1, 1], [], []>} : vector<8x256xf32>, vector<256x256xf32>, vector<8x256xf32> -> vector<8x256xf32>
    %c1_13 = arith.constant 1 : index
    %c0_14 = arith.constant 0 : index
    %19 = vector.load %arg5[%c1_13, %c0_14] : memref<2x256xf32, #tpu.memory_space<vmem>>, vector<1x256xf32>
    %20 = vector.broadcast %19 : vector<1x256xf32> to vector<8x256xf32>
    %21 = arith.addf %18, %20 : vector<8x256xf32>
    %22 = math.tanh %21 : vector<8x256xf32>
    %c0_15 = arith.constant 0 : index
    %c0_16 = arith.constant 0 : index
    %23 = vector.load %arg6[%c0_15, %c0_16] : memref<256x160xf32, #tpu.memory_space<vmem>>, vector<256x160xf32>
    %cst_17 = arith.constant dense<0.000000e+00> : vector<8x160xf32>
    %24 = tpu.matmul %22, %23, %cst_17 {dimension_numbers = #tpu.dot_dimension_numbers<[1], [0], [0], [1], [0, 0, 1, 1], [], []>} : vector<8x256xf32>, vector<256x160xf32>, vector<8x160xf32> -> vector<8x160xf32>
    %c0_18 = arith.constant 0 : index
    %c0_19 = arith.constant 0 : index
    %25 = vector.load %arg7[%c0_18, %c0_19] : memref<1x160xf32, #tpu.memory_space<vmem>>, vector<1x160xf32>
    %26 = vector.broadcast %25 : vector<1x160xf32> to vector<8x160xf32>
    %27 = arith.addf %24, %26 : vector<8x160xf32>
    %28 = vector.extract_strided_slice %27 {offsets = [0, 0], sizes = [8, 128], strides = [1, 1]} : vector<8x160xf32> to vector<8x128xf32>
    %29 = math.tanh %28 : vector<8x128xf32>
    %30 = vector.extract_strided_slice %27 {offsets = [0, 128], sizes = [8, 32], strides = [1, 1]} : vector<8x160xf32> to vector<8x32xf32>
    %c0_20 = arith.constant 0 : index
    %c0_21 = arith.constant 0 : index
    %31 = vector.load %arg8[%c0_20, %c0_21] : memref<128x32xf32, #tpu.memory_space<vmem>>, vector<128x32xf32>
    %cst_22 = arith.constant dense<0.000000e+00> : vector<8x32xf32>
    %32 = tpu.matmul %29, %31, %cst_22 {dimension_numbers = #tpu.dot_dimension_numbers<[1], [0], [0], [1], [0, 0, 1, 1], [], []>} : vector<8x128xf32>, vector<128x32xf32>, vector<8x32xf32> -> vector<8x32xf32>
    %c0_23 = arith.constant 0 : index
    %c0_24 = arith.constant 0 : index
    %33 = vector.load %arg9[%c0_23, %c0_24] : memref<1x32xf32, #tpu.memory_space<vmem>>, vector<1x32xf32>
    %34 = vector.broadcast %33 : vector<1x32xf32> to vector<8x32xf32>
    %35 = arith.addf %32, %34 : vector<8x32xf32>
    %36 = math.tanh %35 : vector<8x32xf32>
    %37 = tpu.iota {dimensions = array<i32: 1>} : vector<8x32xi32>
    %c8_i32 = arith.constant 8 : i32
    %c0_i32 = arith.constant 0 : i32
    %38 = arith.cmpi eq, %c8_i32, %c0_i32 : i32
    %c1_i32 = arith.constant 1 : i32
    %39 = arith.select %38, %c1_i32, %c8_i32 : i32
    %40 = vector.broadcast %39 : i32 to vector<8x32xi32>
    %41 = arith.remsi %37, %40 : vector<8x32xi32>
    %c0_i32_25 = arith.constant 0 : i32
    %42 = vector.broadcast %c0_i32_25 : i32 to vector<8x32xi32>
    %43 = arith.cmpi ne, %41, %42 : vector<8x32xi32>
    %c0_i32_26 = arith.constant 0 : i32
    %44 = vector.broadcast %c0_i32_26 : i32 to vector<8x32xi32>
    %45 = arith.cmpi slt, %41, %44 : vector<8x32xi32>
    %c0_i32_27 = arith.constant 0 : i32
    %46 = arith.cmpi slt, %39, %c0_i32_27 : i32
    %47 = vector.broadcast %46 : i1 to vector<8x32xi1>
    %48 = vector.broadcast %47 : vector<8x32xi1> to vector<8x32xi1>
    %49 = arith.xori %45, %48 : vector<8x32xi1>
    %50 = arith.andi %49, %43 : vector<8x32xi1>
    %51 = vector.broadcast %39 : i32 to vector<8x32xi32>
    %52 = arith.addi %41, %51 : vector<8x32xi32>
    %53 = arith.select %50, %52, %41 : vector<8x32xi1>, vector<8x32xi32>
    %c4_i32 = arith.constant 4 : i32
    %54 = vector.broadcast %c4_i32 : i32 to vector<8x32xi32>
    %55 = arith.cmpi eq, %53, %54 : vector<8x32xi32>
    %cst_28 = arith.constant 0.000000e+00 : f32
    %56 = vector.broadcast %cst_28 : f32 to vector<8x32xf32>
    %57 = arith.maximumf %30, %56 : vector<8x32xf32>
    %58 = math.absf %30 : vector<8x32xf32>
    %cst_29 = arith.constant 0.000000e+00 : f32
    %59 = vector.broadcast %cst_29 : f32 to vector<8x32xf32>
    %60 = arith.subf %59, %58 : vector<8x32xf32>
    %61 = math.exp %60 : vector<8x32xf32>
    %cst_30 = arith.constant 1.000000e+00 : f32
    %62 = vector.broadcast %cst_30 : f32 to vector<8x32xf32>
    %63 = arith.addf %62, %61 : vector<8x32xf32>
    %64 = math.log %63 : vector<8x32xf32>
    %65 = arith.addf %57, %64 : vector<8x32xf32>
    %cst_31 = arith.constant 1.000000e-01 : f32
    %66 = vector.broadcast %cst_31 : f32 to vector<8x32xf32>
    %67 = arith.mulf %66, %65 : vector<8x32xf32>
    %68 = arith.select %55, %67, %30 : vector<8x32xi1>, vector<8x32xf32>
    %69 = arith.addf %36, %68 : vector<8x32xf32>
    %c0_32 = arith.constant 0 : index
    %c0_33 = arith.constant 0 : index
    %70 = vector.load %arg10[%c0_32, %c0_33] : memref<8x32xf32, #tpu.memory_space<vmem>>, vector<8x32xf32>
    tpu.vector_store %arg10[%c0_32, %c0_33], %69 {strides = array<i32>} : memref<8x32xf32, #tpu.memory_space<vmem>>, vector<8x32xf32>,
    return
  }
  func.func @transform_0(%arg0: i32) -> (i32, i32) {
    %c0_i32 = arith.constant 0 : i32
    %c0_i32_0 = arith.constant 0 : i32
    return %arg0, %c0_i32 : i32, i32
  }
  func.func @transform_1(%arg0: i32) -> (i32, i32) {
    %c0_i32 = arith.constant 0 : i32
    %c0_i32_0 = arith.constant 0 : i32
    %c0_i32_1 = arith.constant 0 : i32
    return %c0_i32, %c0_i32_0 : i32, i32
  }
  func.func @transform_2(%arg0: i32) -> (i32, i32) {
    %c0_i32 = arith.constant 0 : i32
    %c0_i32_0 = arith.constant 0 : i32
    %c0_i32_1 = arith.constant 0 : i32
    return %c0_i32, %c0_i32_0 : i32, i32
  }
  func.func @transform_3(%arg0: i32) -> (i32, i32) {
    %c0_i32 = arith.constant 0 : i32
    %c0_i32_0 = arith.constant 0 : i32
    %c0_i32_1 = arith.constant 0 : i32
    return %c0_i32, %c0_i32_0 : i32, i32
  }
  func.func @transform_4(%arg0: i32) -> (i32, i32) {
    %c0_i32 = arith.constant 0 : i32
    %c0_i32_0 = arith.constant 0 : i32
    %c0_i32_1 = arith.constant 0 : i32
    return %c0_i32, %c0_i32_0 : i32, i32
  }
  func.func @transform_5(%arg0: i32) -> (i32, i32) {
    %c0_i32 = arith.constant 0 : i32
    %c0_i32_0 = arith.constant 0 : i32
    %c0_i32_1 = arith.constant 0 : i32
    return %c0_i32, %c0_i32_0 : i32, i32
  }
  func.func @transform_6(%arg0: i32) -> (i32, i32) {
    %c0_i32 = arith.constant 0 : i32
    %c0_i32_0 = arith.constant 0 : i32
    %c0_i32_1 = arith.constant 0 : i32
    return %c0_i32, %c0_i32_0 : i32, i32
  }
  func.func @transform_7(%arg0: i32) -> (i32, i32) {
    %c0_i32 = arith.constant 0 : i32
    %c0_i32_0 = arith.constant 0 : i32
    %c0_i32_1 = arith.constant 0 : i32
    return %c0_i32, %c0_i32_0 : i32, i32
  }
  func.func @transform_8(%arg0: i32) -> (i32, i32) {
    %c0_i32 = arith.constant 0 : i32
    %c0_i32_0 = arith.constant 0 : i32
    %c0_i32_1 = arith.constant 0 : i32
    return %c0_i32, %c0_i32_0 : i32, i32
  }
  func.func @transform_9(%arg0: i32) -> (i32, i32) {
    %c0_i32 = arith.constant 0 : i32
    %c0_i32_0 = arith.constant 0 : i32
    return %arg0, %c0_i32 : i32, i32
  }
}

</mosaic_0001>

<bundles_post_ra>
// kernel: tpu_custom_call.1
= control target key start
LH: loop header
LB: loop body
LE: loop exit
PB: predicated region body
PF: predicated region fallthrough
CT: control target
= control target key end

     0   :  { %v885_v7 = vmov 0.0   ;;  %s1514_s0 = inlined_call_operand.vmem [shape: f32[8,128], index: 0, kind: input, shape index: {}]   ;;  %s1515_s1 = inlined_call_operand.vmem [shape: f32[2,128], index: 1, kind: input, shape index: {}]   ;;  %s1516_s2 = inlined_call_operand.vmem [shape: f32[128,256], index: 2, kind: input, shape index: {}]   ;;  %s1517_s3 = inlined_call_operand.vmem [shape: f32[256,256], index: 3, kind: input, shape index: {}]   ;;  %s1518_s4 = inlined_call_operand.vmem [shape: f32[2,256], index: 4, kind: input, shape index: {}]   ;;  %s1519_s5 = inlined_call_operand.vmem [shape: f32[256,160], index: 5, kind: input, shape index: {}]   ;;  %s1520_s6 = inlined_call_operand.vmem [shape: f32[1,160], index: 6, kind: input, shape index: {}]   ;;  %s1521_s7 = inlined_call_operand.vmem [shape: f32[128,32], index: 7, kind: input, shape index: {}]   ;;  %s1522_s8 = inlined_call_operand.vmem [shape: f32[1,32], index: 8, kind: input, shape index: {}]   ;;  %s1523_s9 = inlined_call_operand.hbm [shape: f32[8,32], index: 9, kind: output, shape index: {}]  }
   0x1   :  { %v49_v0 = vld [vmem:[%s1516_s2 + $0x8] sm:$0xff]  ;;  %v51_v1 = vld [vmem:[%s1516_s2 + $0x18] sm:$0xff]  ;;  %v48_v2 = vld [vmem:[%s1516_s2] sm:$0xff]  ;;  %156 = vmatprep.mubr.f32.mxu0 %v885_v7 }
   0x2   :  { %v657_v3 = vpack.c.bf16 %v51_v1, %v49_v0  ;;  %v50_v4 = vld [vmem:[%s1516_s2 + $0x10] sm:$0xff]  ;;  %v53_v5 = vld [vmem:[%s1516_s2 + $0x28] sm:$0xff]  ;;  %v55_v6 = vld [vmem:[%s1516_s2 + $0x38] sm:$0xff] }
   0x3   :  { %v659_v8 = vpack.c.bf16 %v50_v4, %v48_v2  ;;  %v661_v9 = vpack.c.bf16 %v55_v6, %v53_v5  ;;  %v52_v10 = vld [vmem:[%s1516_s2 + $0x20] sm:$0xff]  ;;  %v54_v11 = vld [vmem:[%s1516_s2 + $0x30] sm:$0xff]  ;;  %v57_v12 = vld [vmem:[%s1516_s2 + $0x48] sm:$0xff] }
   0x4   :  { %658 = vmatprep.subr.bf16.mxu0 %v657_v3  ;;  %v59_v13 = vld [vmem:[%s1516_s2 + $0x58] sm:$0xff]  ;;  %v663_v14 = vpack.c.bf16 %v54_v11, %v52_v10  ;;  %v56_v16 = vld [vmem:[%s1516_s2 + $0x40] sm:$0xff]  ;;  %v58_v17 = vld [vmem:[%s1516_s2 + $0x50] sm:$0xff] }
   0x5   :  { %660 = vmatpush1.bf16.msra.mxu0 %v659_v8  ;;  %v665_v15 = vpack.c.bf16 %v59_v13, %v57_v12  ;;  %v61_v18 = vld [vmem:[%s1516_s2 + $0x68] sm:$0xff]  ;;  %v63_v19 = vld [vmem:[%s1516_s2 + $0x78] sm:$0xff]  ;;  %v667_v20 = vpack.c.bf16 %v58_v17, %v56_v16  ;;  %v60_v22 = vld [vmem:[%s1516_s2 + $0x60] sm:$0xff] }
   0x6   :  { %662 = vmatprep.subr.bf16.mxu0 %v661_v9  ;;  %v669_v21 = vpack.c.bf16 %v63_v19, %v61_v18  ;;  %v62_v23 = vld [vmem:[%s1516_s2 + $0x70] sm:$0xff]  ;;  %v65_v24 = vld [vmem:[%s1516_s2 + $0x88] sm:$0xff]  ;;  %v67_v25 = vld [vmem:[%s1516_s2 + $0x98] sm:$0xff] }
   0x7   :  { %v64_v26 = vld [vmem:[%s1516_s2 + $0x80] sm:$0xff]  ;;  %v66_v27 = vld [vmem:[%s1516_s2 + $0x90] sm:$0xff]  ;;  %v166_v28 = vld [vmem:[%s1517_s3 + $0x8] sm:$0xff]  ;;  %v671_v29 = vpack.c.bf16 %v62_v23, %v60_v22  ;;  %v673_v35 = vpack.c.bf16 %v67_v25, %v65_v24 }
   0x8   :  { %v69_v30 = vld [vmem:[%s1516_s2 + $0xa8] sm:$0xff]  ;;  %v71_v31 = vld [vmem:[%s1516_s2 + $0xb8] sm:$0xff]  ;;  %v165_v33 = vld [vmem:[%s1517_s3] sm:$0xff]  ;;  %v675_v45 = vpack.c.bf16 %v66_v27, %v64_v26 }
   0x9   :  { %664 = vmatpush1.bf16.msra.mxu0 %v663_v14  ;;  %v168_v32 = vld [vmem:[%s1517_s3 + $0x18] sm:$0xff]  ;;  %v167_v34 = vld [vmem:[%s1517_s3 + $0x10] sm:$0xff]  ;;  %v170_v38 = vld [vmem:[%s1517_s3 + $0x28] sm:$0xff]  ;;  %v677_v49 = vpack.c.bf16 %v71_v31, %v69_v30 }
   0xa   :  { %666 = vmatprep.subr.bf16.mxu0 %v665_v15  ;;  %v689_v36 = vpack.c.bf16 %v168_v32, %v166_v28  ;;  %v691_v37 = vpack.c.bf16 %v167_v34, %v165_v33  ;;  %v172_v39 = vld [vmem:[%s1517_s3 + $0x38] sm:$0xff]  ;;  %v169_v40 = vld [vmem:[%s1517_s3 + $0x20] sm:$0xff]  ;;  %v171_v42 = vld [vmem:[%s1517_s3 + $0x30] sm:$0xff] }
   0xb   :  { %v693_v41 = vpack.c.bf16 %v172_v39, %v170_v38  ;;  %v174_v43 = vld [vmem:[%s1517_s3 + $0x48] sm:$0xff]  ;;  %v176_v44 = vld [vmem:[%s1517_s3 + $0x58] sm:$0xff]  ;;  %v68_v46 = vld [vmem:[%s1516_s2 + $0xa0] sm:$0xff]  ;;  %v695_v48 = vpack.c.bf16 %v171_v42, %v169_v40 }
   0xc   :  { %690 = vmatprep.subr.bf16.mxu1 %v689_v36  ;;  %v70_v47 = vld [vmem:[%s1516_s2 + $0xb0] sm:$0xff]  ;;  %v73_v50 = vld [vmem:[%s1516_s2 + $0xc8] sm:$0xff]  ;;  %v697_v51 = vpack.c.bf16 %v176_v44, %v174_v43  ;;  %v173_v52 = vld [vmem:[%s1517_s3 + $0x40] sm:$0xff] }
   0xd   :  { %668 = vmatpush1.bf16.msra.mxu0 %v667_v20  ;;  %692 = vmatpush1.bf16.msra.mxu1 %v691_v37  ;;  %v175_v53 = vld [vmem:[%s1517_s3 + $0x50] sm:$0xff]  ;;  %v75_v54 = vld [vmem:[%s1516_s2 + $0xd8] sm:$0xff]  ;;  %v178_v55 = vld [vmem:[%s1517_s3 + $0x68] sm:$0xff]  ;;  %v679_v58 = vpack.c.bf16 %v70_v47, %v68_v46 }
   0xe   :  { %670 = vmatprep.subr.bf16.mxu0 %v669_v21  ;;  %694 = vmatprep.subr.bf16.mxu1 %v693_v41  ;;  %v180_v56 = vld [vmem:[%s1517_s3 + $0x78] sm:$0xff]  ;;  %v72_v57 = vld [vmem:[%s1516_s2 + $0xc0] sm:$0xff]  ;;  %v74_v59 = vld [vmem:[%s1516_s2 + $0xd0] sm:$0xff]  ;;  %v699_v62 = vpack.c.bf16 %v175_v53, %v173_v52  ;;  %v681_v63 = vpack.c.bf16 %v75_v54, %v73_v50 }
   0xf   :  { %v33_v60 = vld [vmem:[%s1514_s0] sm:$0xff]  ;;  %v77_v0 = vld [vmem:[%s1516_s2 + $0xe8] sm:$0xff]  ;;  %v701_v1 = vpack.c.bf16 %v180_v56, %v178_v55  ;;  %v179_v3 = vld [vmem:[%s1517_s3 + $0x70] sm:$0xff]  ;;  %v683_v9 = vpack.c.bf16 %v74_v59, %v72_v57 }
  0x10   :  { %v600_v61 = vld [vmem:[%s1515_s1] ss:$0 sm:$0xff]  ;;  %v79_v4 = vld [vmem:[%s1516_s2 + $0xf8] sm:$0xff]  ;;  %v182_v5 = vld [vmem:[%s1517_s3 + $0x88] sm:$0xff] }
  0x11   :  { %672 = vmatpush1.bf16.msra.mxu0 %v671_v29  ;;  %696 = vmatpush1.bf16.msra.mxu1 %v695_v48  ;;  %v177_v2 = vld [vmem:[%s1517_s3 + $0x60] sm:$0xff]  ;;  %v184_v6 = vld [vmem:[%s1517_s3 + $0x98] sm:$0xff]  ;;  %v39_v8 = vsub.f32 %v33_v60, %v600_v61  ;;  %v685_v13 = vpack.c.bf16 %v79_v4, %v77_v0  ;;  %v78_v14 = vld [vmem:[%s1516_s2 + $0xf0] sm:$0xff] }
  0x12   :  { %674 = vmatprep.subr.bf16.mxu0 %v673_v35  ;;  %698 = vmatprep.subr.bf16.mxu1 %v697_v51  ;;  %v76_v10 = vld [vmem:[%s1516_s2 + $0xe0] sm:$0xff]  ;;  %v703_v12 = vpack.c.bf16 %v179_v3, %v177_v2  ;;  %v705_v15 = vpack.c.bf16 %v184_v6, %v182_v5  ;;  %v183_v17 = vld [vmem:[%s1517_s3 + $0x90] sm:$0xff]  ;;  %v186_v18 = vld [vmem:[%s1517_s3 + $0xa8] sm:$0xff] }
  0x13   :  { %v601_v11 = vld [vmem:[%s1515_s1 + $0x1] ss:$0 sm:$0xff]  ;;  %v188_v19 = vld [vmem:[%s1517_s3 + $0xb8] sm:$0xff]  ;;  %v687_v21 = vpack.c.bf16 %v78_v14, %v76_v10 }
  0x14   :  { %v181_v16 = vld [vmem:[%s1517_s3 + $0x80] sm:$0xff]  ;;  %v45_v20 = vmul.f32 %v601_v11, %v39_v8 }
  0x15   :  { %676 = vmatpush1.bf16.msra.mxu0 %v675_v45  ;;  %700 = vmatpush1.bf16.msra.mxu1 %v699_v62  ;;  %v707_v22 = vpack.c.bf16 %v183_v17, %v181_v16 }
  0x16   :  { %678 = vmatprep.subr.bf16.mxu0 %v677_v49  ;;  %702 = vmatprep.subr.bf16.mxu1 %v701_v1 }
  0x19   :  { %680 = vmatpush1.bf16.msra.mxu0 %v679_v58  ;;  %704 = vmatpush1.bf16.msra.mxu1 %v703_v12 }
  0x1a   :  { %682 = vmatprep.subr.bf16.mxu0 %v681_v63 }
  0x1d   :  { %684 = vmatpush1.bf16.msra.mxu0 %v683_v9 }
  0x1e   :  { %14 = vsyncpa [#allocation3], 0  ;;  %686 = vmatprep.subr.bf16.mxu0 %v685_v13  ;;  %706 = vmatprep.subr.bf16.mxu1 %v705_v15  ;;  %v709_v23 = vpack.c.bf16 %v188_v19, %v186_v18  ;;  %v185_v24 = vld [vmem:[%s1517_s3 + $0xa0] sm:$0xff]  ;;  %v187_v25 = vld [vmem:[%s1517_s3 + $0xb0] sm:$0xff]  ;;  %v602_v28 = vclamps-f32 %v45_v20, 10.0  ;;  %vm887_vm0 = vmmov 0  }
  0x1f   :  { %v190_v26 = vld [vmem:[%s1517_s3 + $0xc8] sm:$0xff]  ;;  %v192_v27 = vld [vmem:[%s1517_s3 + $0xd8] sm:$0xff]  ;;  %708 = vmatpush1.bf16.msra.mxu1 %v707_v22  ;;  %v711_v29 = vpack.c.bf16 %v187_v25, %v185_v24  ;;  %v189_v31 = vld [vmem:[%s1517_s3 + $0xc0] sm:$0xff]  ;;  %s888_s2 = smov [#allocation2]   ;;  %vm584_vm2 = vcmask 261120  }
  0x20   :  { %710 = vmatprep.subr.bf16.mxu1 %v709_v23  ;;  %v713_v30 = vpack.c.bf16 %v192_v27, %v190_v26  ;;  %v191_v32 = vld [vmem:[%s1517_s3 + $0xd0] sm:$0xff]  ;;  %v194_v33 = vld [vmem:[%s1517_s3 + $0xe8] sm:$0xff]  ;;  %v196_v34 = vld [vmem:[%s1517_s3 + $0xf8] sm:$0xff]  ;;  %s592_s16 = sshll.u32 %s888_s2, 4  ;;  %s593_s16 = int_to_ptr.vmem [resolvable:$true] %s592_s16 }
  0x21   :  { %688 = vmatpush1.bf16.msra.mxu0 %v687_v21  ;;  %v715_v35 = vpack.c.bf16 %v191_v32, %v189_v31  ;;  %v717_v36 = vpack.c.bf16 %v196_v34, %v194_v33  ;;  %v193_v37 = vld [vmem:[%s1517_s3 + $0xe0] sm:$0xff]  ;;  %v195_v38 = vld [vmem:[%s1517_s3 + $0xf0] sm:$0xff]  ;;  %v198_v39 = vld [vmem:[%s1517_s3 + $0x108] sm:$0xff]  ;;  %p866_p1 = scmp.lt.s32.totalorder %s593_s16, %s593_s16 }
  0x22   :  { %v200_v40 = vld [vmem:[%s1517_s3 + $0x118] sm:$0xff]  ;;  %v719_v41 = vpack.c.bf16 %v195_v38, %v193_v37  ;;  %v197_v43 = vld [vmem:[%s1517_s3 + $0x100] sm:$0xff]  ;;  %v199_v44 = vld [vmem:[%s1517_s3 + $0x110] sm:$0xff] }
  0x23   :  { %712 = vmatpush1.bf16.msra.mxu1 %v711_v29  ;;  %v721_v42 = vpack.c.bf16 %v200_v40, %v198_v39  ;;  %v202_v45 = vld [vmem:[%s1517_s3 + $0x128] sm:$0xff]  ;;  %v204_v46 = vld [vmem:[%s1517_s3 + $0x138] sm:$0xff]  ;;  %v723_v47 = vpack.c.bf16 %v199_v44, %v197_v43  ;;  %v201_v49 = vld [vmem:[%s1517_s3 + $0x120] sm:$0xff] }
  0x24   :  { %157 = vmatmul.mubr.f32.vlgmr.msra.gmra.mrb[0].mxu0 %v602_v28  ;;  %714 = vmatprep.subr.bf16.mxu1 %v713_v30  ;;  %v725_v48 = vpack.c.bf16 %v204_v46, %v202_v45  ;;  %v203_v50 = vld [vmem:[%s1517_s3 + $0x130] sm:$0xff]  ;;  %v206_v51 = vld [vmem:[%s1517_s3 + $0x148] sm:$0xff]  ;;  %v208_v52 = vld [vmem:[%s1517_s3 + $0x158] sm:$0xff] }
  0x25   :  { %v727_v53 = vpack.c.bf16 %v203_v50, %v201_v49  ;;  %v729_v54 = vpack.c.bf16 %v208_v52, %v206_v51  ;;  %v205_v55 = vld [vmem:[%s1517_s3 + $0x140] sm:$0xff]  ;;  %v207_v56 = vld [vmem:[%s1517_s3 + $0x150] sm:$0xff]  ;;  %v210_v57 = vld [vmem:[%s1517_s3 + $0x168] sm:$0xff] }
  0x26   :  { %v212_v58 = vld [vmem:[%s1517_s3 + $0x178] sm:$0xff]  ;;  %v731_v59 = vpack.c.bf16 %v207_v56, %v205_v55  ;;  %v209_v61 = vld [vmem:[%s1517_s3 + $0x160] sm:$0xff]  ;;  %v211_v62 = vld [vmem:[%s1517_s3 + $0x170] sm:$0xff] }
  0x27   :  { %716 = vmatpush1.bf16.msra.mxu1 %v715_v35  ;;  %v733_v60 = vpack.c.bf16 %v212_v58, %v210_v57  ;;  %v735_v63 = vpack.c.bf16 %v211_v62, %v209_v61  ;;  %v214_v0 = vld [vmem:[%s1517_s3 + $0x188] sm:$0xff]  ;;  %v216_v1 = vld [vmem:[%s1517_s3 + $0x198] sm:$0xff]  ;;  %v213_v3 = vld [vmem:[%s1517_s3 + $0x180] sm:$0xff] }
  0x28   :  { %718 = vmatprep.subr.bf16.mxu1 %v717_v36  ;;  %v737_v2 = vpack.c.bf16 %v216_v1, %v214_v0  ;;  %v215_v4 = vld [vmem:[%s1517_s3 + $0x190] sm:$0xff]  ;;  %v218_v6 = vld [vmem:[%s1517_s3 + $0x1a8] sm:$0xff]  ;;  %v220_v8 = vld [vmem:[%s1517_s3 + $0x1b8] sm:$0xff] }
  0x29   :  { %v739_v5 = vpack.c.bf16 %v215_v4, %v213_v3  ;;  %v741_v9 = vpack.c.bf16 %v220_v8, %v218_v6  ;;  %v217_v10 = vld [vmem:[%s1517_s3 + $0x1a0] sm:$0xff]  ;;  %v219_v11 = vld [vmem:[%s1517_s3 + $0x1b0] sm:$0xff]  ;;  %v222_v13 = vld [vmem:[%s1517_s3 + $0x1c8] sm:$0xff] }
  0x2a   :  { %v743_v12 = vpack.c.bf16 %v219_v11, %v217_v10  ;;  %v224_v14 = vld [vmem:[%s1517_s3 + $0x1d8] sm:$0xff]  ;;  %v221_v15 = vld [vmem:[%s1517_s3 + $0x1c0] sm:$0xff]  ;;  %v223_v17 = vld [vmem:[%s1517_s3 + $0x1d0] sm:$0xff] }
  0x2b   :  { %720 = vmatpush1.bf16.msra.mxu1 %v719_v41  ;;  %v745_v16 = vpack.c.bf16 %v224_v14, %v222_v13  ;;  %v226_v18 = vld [vmem:[%s1517_s3 + $0x1e8] sm:$0xff]  ;;  %v228_v19 = vld [vmem:[%s1517_s3 + $0x1f8] sm:$0xff]  ;;  %v747_v20 = vpack.c.bf16 %v223_v17, %v221_v15  ;;  %v225_v22 = vld [vmem:[%s1517_s3 + $0x1e0] sm:$0xff] }
  0x2c   :  { %722 = vmatprep.subr.bf16.mxu1 %v721_v42  ;;  %v749_v21 = vpack.c.bf16 %v228_v19, %v226_v18  ;;  %v227_v23 = vld [vmem:[%s1517_s3 + $0x1f0] sm:$0xff]  ;;  %v316_v25 = vld [vmem:[%s1519_s5 + $0x8] sm:$0xff]  ;;  %v318_v26 = vld [vmem:[%s1519_s5 + $0x18] sm:$0xff] }
  0x2d   :  { %v751_v24 = vpack.c.bf16 %v227_v23, %v225_v22  ;;  %v315_v27 = vld [vmem:[%s1519_s5] sm:$0xff]  ;;  %v753_v28 = vpack.c.bf16 %v318_v26, %v316_v25  ;;  %v317_v29 = vld [vmem:[%s1519_s5 + $0x10] sm:$0xff]  ;;  %v320_v30 = vld [vmem:[%s1519_s5 + $0x28] sm:$0xff] }
  0x2e   :  { %v322_v31 = vld [vmem:[%s1519_s5 + $0x38] sm:$0xff]  ;;  %v755_v32 = vpack.c.bf16 %v317_v29, %v315_v27  ;;  %v319_v34 = vld [vmem:[%s1519_s5 + $0x20] sm:$0xff]  ;;  %v321_v35 = vld [vmem:[%s1519_s5 + $0x30] sm:$0xff] }
  0x2f   :  { %724 = vmatpush1.bf16.msra.mxu1 %v723_v47  ;;  %v757_v33 = vpack.c.bf16 %v322_v31, %v320_v30  ;;  %v324_v36 = vld [vmem:[%s1519_s5 + $0x48] sm:$0xff]  ;;  %754 = vmatprep.subr.bf16.mxu0 %v753_v28  ;;  %v326_v37 = vld [vmem:[%s1519_s5 + $0x58] sm:$0xff]  ;;  %v759_v38 = vpack.c.bf16 %v321_v35, %v319_v34  ;;  %v323_v40 = vld [vmem:[%s1519_s5 + $0x40] sm:$0xff]  ;;  %v82_v34 = vlaneseq }
  0x30   :  { %726 = vmatprep.subr.bf16.mxu1 %v725_v48  ;;  %756 = vmatpush1.bf16.msra.mxu0 %v755_v32  ;;  %v761_v39 = vpack.c.bf16 %v326_v37, %v324_v36  ;;  %v325_v41 = vld [vmem:[%s1519_s5 + $0x50] sm:$0xff]  ;;  %v328_v42 = vld [vmem:[%s1519_s5 + $0x68] sm:$0xff]  ;;  %v330_v43 = vld [vmem:[%s1519_s5 + $0x78] sm:$0xff] }
  0x31   :  { %758 = vmatprep.subr.bf16.mxu0 %v757_v33  ;;  %v763_v44 = vpack.c.bf16 %v325_v41, %v323_v40  ;;  %v765_v45 = vpack.c.bf16 %v330_v43, %v328_v42  ;;  %v327_v46 = vld [vmem:[%s1519_s5 + $0x60] sm:$0xff]  ;;  %v329_v47 = vld [vmem:[%s1519_s5 + $0x70] sm:$0xff]  ;;  %v332_v48 = vld [vmem:[%s1519_s5 + $0x88] sm:$0xff]  ;;  %v83_v35 = vshrl.u32 %v82_v34, 7 }
  0x32   :  { %v334_v49 = vld [vmem:[%s1519_s5 + $0x98] sm:$0xff]  ;;  %v767_v50 = vpack.c.bf16 %v329_v47, %v327_v46  ;;  %v331_v52 = vld [vmem:[%s1519_s5 + $0x80] sm:$0xff]  ;;  %v341_v1 = vld [vmem:[%s1519_s5 + $0xd0] sm:$0xff] }
  0x33   :  { %728 = vmatpush1.bf16.msra.mxu1 %v727_v53  ;;  %v769_v51 = vpack.c.bf16 %v334_v49, %v332_v48  ;;  %v333_v53 = vld [vmem:[%s1519_s5 + $0x90] sm:$0xff]  ;;  %v338_v55 = vld [vmem:[%s1519_s5 + $0xb8] sm:$0xff]  ;;  %v335_v58 = vld [vmem:[%s1519_s5 + $0xa0] sm:$0xff]  ;;  %v1382_v36 = vsub.s32 0, %v83_v35 }
  0x34   :  { %730 = vmatprep.subr.bf16.mxu1 %v729_v54  ;;  %760 = vmatpush1.bf16.msra.mxu0 %v759_v38  ;;  %v336_v54 = vld [vmem:[%s1519_s5 + $0xa8] sm:$0xff]  ;;  %v771_v56 = vpack.c.bf16 %v333_v53, %v331_v52  ;;  %v342_v61 = vld [vmem:[%s1519_s5 + $0xd8] sm:$0xff]  ;;  %v339_v0 = vld [vmem:[%s1519_s5 + $0xc0] sm:$0xff]  ;;  %v1387_v38 = vsub.s32 1, %v83_v35 }
  0x35   :  { %762 = vmatprep.subr.bf16.mxu0 %v761_v39  ;;  %v773_v57 = vpack.c.bf16 %v338_v55, %v336_v54  ;;  %v346_v3 = vld [vmem:[%s1519_s5 + $0xf8] sm:$0xff]  ;;  %v779_v4 = vpack.c.bf16 %v341_v1, %v339_v0  ;;  %v343_v6 = vld [vmem:[%s1519_s5 + $0xe0] sm:$0xff]  ;;  %v345_v8 = vld [vmem:[%s1519_s5 + $0xf0] sm:$0xff] }
  0x36   :  { %v350_v10 = vld [vmem:[%s1519_s5 + $0x118] sm:$0xff]  ;;  %v783_v11 = vpack.c.bf16 %v345_v8, %v343_v6  ;;  %v347_v13 = vld [vmem:[%s1519_s5 + $0x100] sm:$0xff]  ;;  %v349_v14 = vld [vmem:[%s1519_s5 + $0x110] sm:$0xff] }
  0x37   :  { %732 = vmatpush1.bf16.msra.mxu1 %v731_v59  ;;  %v337_v59 = vld [vmem:[%s1519_s5 + $0xb0] sm:$0xff]  ;;  %v352_v15 = vld [vmem:[%s1519_s5 + $0x128] sm:$0xff]  ;;  %v787_v17 = vpack.c.bf16 %v349_v14, %v347_v13  ;;  %v351_v19 = vld [vmem:[%s1519_s5 + $0x120] sm:$0xff] }
  0x38   :  { %734 = vmatprep.subr.bf16.mxu1 %v733_v60  ;;  %764 = vmatpush1.bf16.msra.mxu0 %v763_v44  ;;  %v340_v60 = vld [vmem:[%s1519_s5 + $0xc8] sm:$0xff]  ;;  %v775_v62 = vpack.c.bf16 %v337_v59, %v335_v58  ;;  %v358_v22 = vld [vmem:[%s1519_s5 + $0x158] sm:$0xff]  ;;  %v355_v25 = vld [vmem:[%s1519_s5 + $0x140] sm:$0xff] }
  0x39   :  { %766 = vmatprep.subr.bf16.mxu0 %v765_v45  ;;  %v357_v26 = vld [vmem:[%s1519_s5 + $0x150] sm:$0xff]  ;;  %v360_v27 = vld [vmem:[%s1519_s5 + $0x168] sm:$0xff]  ;;  %v362_v28 = vld [vmem:[%s1519_s5 + $0x178] sm:$0xff] }
  0x3a   :  { %v795_v29 = vpack.c.bf16 %v357_v26, %v355_v25  ;;  %v797_v30 = vpack.c.bf16 %v362_v28, %v360_v27  ;;  %v359_v31 = vld [vmem:[%s1519_s5 + $0x160] sm:$0xff]  ;;  %v361_v32 = vld [vmem:[%s1519_s5 + $0x170] sm:$0xff]  ;;  %v364_v47 = vld [vmem:[%s1519_s5 + $0x188] sm:$0xff] }
  0x3b   :  { %736 = vmatpush1.bf16.msra.mxu1 %v735_v63  ;;  %v777_v63 = vpack.c.bf16 %v342_v61, %v340_v60  ;;  %v799_v33 = vpack.c.bf16 %v361_v32, %v359_v31  ;;  %v80_v37 = vld [vmem:[%s1518_s4] ss:$2 sm:$0x3]  ;;  %v366_v48 = vld [vmem:[%s1519_s5 + $0x198] sm:$0xff]  ;;  %v368_v53 = vld [vmem:[%s1519_s5 + $0x1a8] sm:$0xff] }
  0x3c   :  { %738 = vmatprep.subr.bf16.mxu1 %v737_v2  ;;  %768 = vmatpush1.bf16.msra.mxu0 %v767_v50  ;;  %v344_v2 = vld [vmem:[%s1519_s5 + $0xe8] sm:$0xff]  ;;  %v85_v39 = vrot.slane %v80_v37, %v1382_v36  ;;  %v89_v40 = vrot.slane %v80_v37, %v1387_v38  ;;  %v801_v49 = vpack.c.bf16 %v366_v48, %v364_v47  ;;  %v363_v50 = vld [vmem:[%s1519_s5 + $0x180] sm:$0xff]  ;;  %v370_v54 = vld [vmem:[%s1519_s5 + $0x1b8] sm:$0xff] }
  0x3d   :  { %770 = vmatprep.subr.bf16.mxu0 %v769_v51  ;;  %v365_v51 = vld [vmem:[%s1519_s5 + $0x190] sm:$0xff]  ;;  %v805_v55 = vpack.c.bf16 %v370_v54, %v368_v53  ;;  %v372_v59 = vld [vmem:[%s1519_s5 + $0x1c8] sm:$0xff]  ;;  %v374_v60 = vld [vmem:[%s1519_s5 + $0x1d8] sm:$0xff] }
  0x3e   :  { %v803_v52 = vpack.c.bf16 %v365_v51, %v363_v50  ;;  %v371_v61 = vld [vmem:[%s1519_s5 + $0x1c0] sm:$0xff]  ;;  %v376_v0 = vld [vmem:[%s1519_s5 + $0x1e8] sm:$0xff]  ;;  %v378_v1 = vld [vmem:[%s1519_s5 + $0x1f8] sm:$0xff] }
  0x3f   :  { %740 = vmatpush1.bf16.msra.mxu1 %v739_v5  ;;  %v781_v5 = vpack.c.bf16 %v346_v3, %v344_v2  ;;  %v813_v3 = vpack.c.bf16 %v378_v1, %v376_v0  ;;  %v463_v8 = vld [vmem:[%s1521_s7] sm:$0xff]  ;;  %v466_v13 = vld [vmem:[%s1521_s7 + $0x18] sm:$0xff] }
  0x40   :  { %742 = vmatprep.subr.bf16.mxu1 %v741_v9  ;;  %772 = vmatpush1.bf16.msra.mxu0 %v771_v56  ;;  %v348_v9 = vld [vmem:[%s1519_s5 + $0x108] sm:$0xff]  ;;  %v367_v56 = vld [vmem:[%s1519_s5 + $0x1a0] sm:$0xff]  ;;  %v474_v35 = vld [vmem:[%s1521_s7 + $0x58] sm:$0xff] }
  0x41   :  { %774 = vmatprep.subr.bf16.mxu0 %v773_v57  ;;  %v369_v57 = vld [vmem:[%s1519_s5 + $0x1b0] sm:$0xff] }
  0x42   :  { %v807_v58 = vpack.c.bf16 %v369_v57, %v367_v56 }
  0x43   :  { %744 = vmatpush1.bf16.msra.mxu1 %v743_v12  ;;  %v785_v12 = vpack.c.bf16 %v350_v10, %v348_v9  ;;  %v464_v9 = vld [vmem:[%s1521_s7 + $0x8] sm:$0xff]  ;;  %v465_v10 = vld [vmem:[%s1521_s7 + $0x10] sm:$0xff] }
  0x44   :  { %746 = vmatprep.subr.bf16.mxu1 %v745_v16  ;;  %776 = vmatpush1.bf16.msra.mxu0 %v775_v62  ;;  %v354_v16 = vld [vmem:[%s1519_s5 + $0x138] sm:$0xff]  ;;  %v809_v62 = vpack.c.bf16 %v374_v60, %v372_v59  ;;  %v821_v14 = vpack.c.bf16 %v466_v13, %v465_v10 }
  0x45   :  { %778 = vmatprep.subr.bf16.mxu0 %v777_v63  ;;  %v789_v18 = vpack.c.bf16 %v354_v16, %v352_v15  ;;  %v373_v63 = vld [vmem:[%s1519_s5 + $0x1d0] sm:$0xff]  ;;  %v467_v15 = vld [vmem:[%s1521_s7 + $0x20] sm:$0xff]  ;;  %v468_v16 = vld [vmem:[%s1521_s7 + $0x28] sm:$0xff] }
  0x46   :  { %v811_v2 = vpack.c.bf16 %v373_v63, %v371_v61 }
  0x47   :  { %748 = vmatpush1.bf16.msra.mxu1 %v747_v20  ;;  %v353_v20 = vld [vmem:[%s1519_s5 + $0x130] sm:$0xff] }
  0x48   :  { %750 = vmatprep.subr.bf16.mxu1 %v749_v21  ;;  %780 = vmatpush1.bf16.msra.mxu0 %v779_v4  ;;  %v356_v21 = vld [vmem:[%s1519_s5 + $0x148] sm:$0xff]  ;;  %v791_v23 = vpack.c.bf16 %v353_v20, %v351_v19  ;;  %v375_v4 = vld [vmem:[%s1519_s5 + $0x1e0] sm:$0xff]  ;;  %v470_v19 = vld [vmem:[%s1521_s7 + $0x38] sm:$0xff] }
  0x49   :  { %782 = vmatprep.subr.bf16.mxu0 %v781_v5  ;;  %v377_v5 = vld [vmem:[%s1519_s5 + $0x1f0] sm:$0xff] }
  0x4a   :  { %v815_v6 = vpack.c.bf16 %v377_v5, %v375_v4 }
  0x4b   :  { %752 = vmatpush1.bf16.msra.mxu1 %v751_v24  ;;  %v793_v24 = vpack.c.bf16 %v358_v22, %v356_v21  ;;  %v471_v21 = vld [vmem:[%s1521_s7 + $0x40] sm:$0xff]  ;;  %v472_v22 = vld [vmem:[%s1521_s7 + $0x48] sm:$0xff] }
  0x4c   :  { %784 = vmatpush1.bf16.msra.mxu0 %v783_v11  ;;  %v886_v11 = vmov 0.0|0.0  }
  0x4d   :  { %786 = vmatprep.subr.bf16.mxu0 %v785_v12  ;;  %817 = vmatprep.subr.bf16.mxu1 %v886_v11  ;;  %v818_v12 = vpack.c.bf16 %v464_v9, %v463_v8 }
  0x50   :  { %788 = vmatpush1.bf16.msra.mxu0 %v787_v17  ;;  %v824_v17 = vpack.c.bf16 %v468_v16, %v467_v15 }
  0x51   :  { %790 = vmatprep.subr.bf16.mxu0 %v789_v18  ;;  %v469_v18 = vld [vmem:[%s1521_s7 + $0x30] sm:$0xff] }
  0x52   :  { %v827_v20 = vpack.c.bf16 %v470_v19, %v469_v18 }
  0x54   :  { %792 = vmatpush1.bf16.msra.mxu0 %v791_v23  ;;  %v830_v23 = vpack.c.bf16 %v472_v22, %v471_v21 }
  0x55   :  { %794 = vmatprep.subr.bf16.mxu0 %v793_v24  ;;  %v603_v24 = vld [vmem:[%s1518_s4 + $0x1] ss:$2 sm:$0x3] }
  0x56   :  { %v235_v25 = vrot.slane %v603_v24, %v1382_v36  ;;  %v239_v26 = vrot.slane %v603_v24, %v1387_v38 }
  0x58   :  { %796 = vmatpush1.bf16.msra.mxu0 %v795_v29 }
  0x59   :  { %798 = vmatprep.subr.bf16.mxu0 %v797_v30 }
  0x5c   :  { %800 = vmatpush1.bf16.msra.mxu0 %v799_v33  ;;  %v473_v33 = vld [vmem:[%s1521_s7 + $0x50] sm:$0xff] }
  0x5d   :  { %802 = vmatprep.subr.bf16.mxu0 %v801_v49  ;;  %v833_v37 = vpack.c.bf16 %v474_v35, %v473_v33 }
  0x60   :  { %804 = vmatpush1.bf16.msra.mxu0 %v803_v52 }
  0x61   :  { %806 = vmatprep.subr.bf16.mxu0 %v805_v55 }
  0x64   :  { %808 = vmatpush1.bf16.msra.mxu0 %v807_v58 }
  0x65   :  { %810 = vmatprep.subr.bf16.mxu0 %v809_v62  ;;  %v558_v62 = vand.u32 127, %v82_v34 }
  0x67   :  { %v563_v0 = vand.u32 7, %v558_v62 }
  0x68   :  { %812 = vmatpush1.bf16.msra.mxu0 %v811_v2 }
  0x69   :  { %814 = vmatprep.subr.bf16.mxu0 %v813_v3  ;;  %vm571_vm1 = vcmp.eq.s32.totalorder %v563_v0, 4 }
  0x6c   :  { %816 = vmatpush1.bf16.msra.mxu0 %v815_v6 }
  0xf7   :  { %v158_v41 = vpop.f32.mrb[0].mxu0 }
  0xf8   :  { %v159_v42 = vadd.f32 %v158_v41, %v85_v39  ;;  %v160_v43 = vpop.f32.mrb[1].mxu0  ;;  %v475_v39 = vld [vmem:[%s1521_s7 + $0x60] sm:$0xff] }
  0xf9   :  { %v161_v44 = vadd.f32 %v160_v43, %v89_v40  ;;  %v476_v40 = vld [vmem:[%s1521_s7 + $0x68] sm:$0xff]  ;;  %v478_v43 = vld [vmem:[%s1521_s7 + $0x78] sm:$0xff] }
  0xfa   :  { %v836_v41 = vpack.c.bf16 %v476_v40, %v475_v39 }
  0xfb   :  { %845 = vtanh.f32 %v161_v44 }
  0xfc   :  { %847 = vtanh.f32 %v159_v42  ;;  %v477_v42 = vld [vmem:[%s1521_s7 + $0x70] sm:$0xff] }
  0xfd   :  { %v839_v44 = vpack.c.bf16 %v478_v43, %v477_v42 }
 0x105   :  { %v846_v45 = vpop.eup %845 }
 0x106   :  { %v848_v46 = vpop.eup %847  ;;  %306 = vmatprep.mubr.f32.mxu1 %v846_v45  ;;  %v379_v45 = vld [vmem:[%s1520_s6] sm:$0x3] }
 0x107   :  { %307 = vmatmul.mubr.f32.vlgmr.msra.gmra.mrb[0].mxu1 %v848_v46  ;;  %v384_v46 = vrot.slane %v379_v45, %v1382_v36  ;;  %v388_v51 = vrot.slane %v379_v45, %v1387_v38  ;;  %v604_v36 = vld [vmem:[%s1522_s8] ss:$0 sm:$0xff]  ;;  %s861_s8 = scalar_lea.vmem %s593_s16, 128 }
 0x108   :  { %819 = vmatpush3.bf16.msra.mxu1 %v818_v12  ;;  %654 = vmatprep.mubr.msk.f32.mxu1 %vm887_vm0, %v885_v7  ;;  %p862_p0 = scmp.ne.s32.totalorder %s593_s16, %s861_s8  ;;  %p867_p2 = scmp.lt.s32.totalorder %s861_s8, %s861_s8 }
 0x109   :  { %820 = vmatprep.subr.bf16.mxu1 %v886_v11 }
 0x10a   :  { %p868_p3 = por %p867_p2, %p866_p1 }
 0x10c   :  { %822 = vmatpush3.bf16.msra.mxu1 %v821_v14  ;;  %p869_p4 = pnand %p868_p3, %p862_p0 }
 0x10d   :  { %823 = vmatprep.subr.bf16.mxu1 %v886_v11 }
 0x110   :  { %825 = vmatpush3.bf16.msra.mxu1 %v824_v17 }
 0x111   :  { %826 = vmatprep.subr.bf16.mxu1 %v886_v11 }
 0x114   :  { %828 = vmatpush3.bf16.msra.mxu1 %v827_v20 }
 0x115   :  { %829 = vmatprep.subr.bf16.mxu1 %v886_v11 }
 0x118   :  { %831 = vmatpush3.bf16.msra.mxu1 %v830_v23 }
 0x119   :  { %832 = vmatprep.subr.bf16.mxu1 %v886_v11 }
 0x11c   :  { %834 = vmatpush3.bf16.msra.mxu1 %v833_v37 }
 0x11d   :  { %835 = vmatprep.subr.bf16.mxu1 %v886_v11 }
 0x120   :  { %837 = vmatpush3.bf16.msra.mxu1 %v836_v41 }
 0x121   :  { %838 = vmatprep.subr.bf16.mxu1 %v886_v11 }
 0x124   :  { %840 = vmatpush3.bf16.msra.mxu1 %v839_v44 }
 0x1da   :  { %v308_v27 = vpop.f32.mrb[0].mxu1 }
 0x1db   :  { %v309_v28 = vadd.f32 %v308_v27, %v235_v25  ;;  %v310_v29 = vpop.f32.mrb[1].mxu1 }
 0x1dc   :  { %v311_v30 = vadd.f32 %v310_v29, %v239_v26 }
 0x1de   :  { %849 = vtanh.f32 %v311_v30 }
 0x1df   :  { %851 = vtanh.f32 %v309_v28 }
 0x1e8   :  { %v850_v31 = vpop.eup %849 }
 0x1e9   :  { %v852_v32 = vpop.eup %851  ;;  %455 = vmatprep.mubr.f32.mxu0 %v850_v31 }
 0x1ea   :  { %456 = vmatmul.mubr.f32.vlgmr.msra.gmra.mrb[2].mxu0 %v852_v32 }
 0x2bd   :  { %v457_v47 = vpop.f32.mrb[2].mxu0 }
 0x2be   :  { %v458_v48 = vadd.f32 %v457_v47, %v384_v46  ;;  %v459_v49 = vpop.f32.mrb[3].mxu0 }
 0x2bf   :  { %v460_v52 = vadd.f32 %v459_v49, %v388_v51 }
 0x2c0   :  { %853 = vtanh.f32 %v458_v48 }
 0x2c1   :  { %v573_v53 = vand.u32 2147483647, %v460_v52  ;;  %v572_v38 = vmax.f32 %v460_v52, 0.0 }
 0x2c3   :  { %v574_v54 = vsub.f32 0.0, %v573_v53 }
 0x2c5   :  { %v575_v55 = vmul.f32 1.442695, %v574_v54 }
 0x2c7   :  { %855 = vpow2.f32 %v575_v55 }
 0x2ca   :  { %v854_v50 = vpop.eup %853 }
 0x2cb   :  { %655 = vmatmul.mubr.f32.vlgmr.msra.gmra.mrb[2].mxu1 %v854_v50 }
 0x2d1   :  { %v856_v7 = vpop.eup %855 }
 0x2d2   :  { %v577_v56 = vadd.f32 1.0, %v856_v7 }
 0x2d4   :  { %857 = vlog2.f32 %v577_v56 }
 0x2de   :  { %v858_v57 = vpop.eup %857 }
 0x2df   :  { %v579_v59 = vmul.f32 0.6931472, %v858_v57 }
 0x2e1   :  { %v580_v63 = vadd.f32 %v579_v59, %v572_v38 }
 0x2e3   :  { %v581_v1 = vmul.f32 0.1, %v580_v63 }
 0x2e5   :  { %v582_v3 = vsel %vm571_vm1, %v581_v1, %v460_v52 }
 0x39e   :  { %v552_v58 = vpop.f32.mrb[2].mxu1 }
 0x39f   :  { %v553_v60 = vadd.f32 %v604_v36, %v552_v58  ;;  %v656_v61 = vpop.f32.mrb[3].mxu1 }
 0x3a1   :  { %859 = vtanh.f32 %v553_v60 }
 0x3ab   :  { %v860_v2 = vpop.eup %859 }
 0x3ac   :  { %v583_v4 = vadd.f32 %v860_v2, %v582_v3 }
 0x3ae   :  { %585 = vst.msk [vmem:[#allocation2] sm:$0xff] %vm584_vm2, %v583_v4 }
 0x3af   :  { %872 = shalt.err (!%p869_p4)
}
 0x3b0   :  { %s873_s18 = scalar_lea.hbm %s1523_s9, 128 }
 0x3b1   :  { %p874_p5 = scmp.ne.s32.totalorder %s1523_s9, %s873_s18  ;;  %p877_p6 = scmp.lt.u32.totalorder %s873_s18, %s1523_s9 }
 0x3b3   :  { %p879_p7 = pnand %p877_p6, %p874_p5 }
 0x3b5   :  { %882 = shalt.err (!%p879_p7)
}
 0x3b6   :  { %595 = dma.vmem_to_hbm [thread:$0]  %s593_s16, 128, %s1523_s9, [#allocation3]  }
 0x3b7   :  { %883 = dma.done.wait [#allocation3], 128  }
 0x3b8   :  { %884 = vsyncadd [#allocation3], 4294967168 }
 0x3b9   :  { %599 = vsyncpa [#allocation3], 1 }

</bundles_post_ra>
